<compile_context>
chip_gen: v5e
topology: v5e:2x2
jax: 0.10.0
libtpu: 0.0.40
codegen_flags: <defaults>
</compile_context>

<pallas_src>
import functools
import math

import jax
import jax.numpy as jnp
from jax.experimental import pallas as pl
from jax.experimental.pallas import tpu as pltpu


def _layernorm(x, w, b, eps=1e-5):
    # x: (L, E) fp32; w, b: (1, E) fp32  (matches torch LayerNorm-in-fp32)
    mu = jnp.mean(x, axis=-1, keepdims=True)
    var = jnp.mean((x - mu) ** 2, axis=-1, keepdims=True)
    return (x - mu) * jax.lax.rsqrt(var + eps) * w + b


def _swap_leading(t):
    """(A, B, D) -> (B, A, D); lane (last) dim untouched."""
    if hasattr(pltpu, "einshape"):
        return pltpu.einshape("abd->bad", t)    # lane-layout-aware permute
    return jnp.transpose(t, (1, 0, 2))


def _block_kernel(x_ref,
                  ln1_w_ref, ln1_b_ref,
                  w_in_ref, b_in_ref,          # (E, 3E) bf16, (1, 3E) f32 (q part pre-scaled)
                  w_out_ref, b_out_ref,        # (E, E)  bf16, (1, E)  f32
                  ln2_w_ref, ln2_b_ref,
                  w_fc_ref, b_fc_ref,          # (E, 4E) bf16, (1, 4E) f32
                  w_proj_ref, b_proj_ref,      # (4E, E) bf16, (1, E)  f32
                  o_ref,
                  *, n_head):
    _, L, E = x_ref.shape
    H = n_head
    Dh = E // H

    # fp32 residual stream.
    x = x_ref[0].astype(jnp.float32)                         # (L, E)

    # ---- ln_1 ----
    xn = _layernorm(x, ln1_w_ref[...], ln1_b_ref[...])

    # ---- fused QKV projection: bf16 operands, fp32 accumulation ----
    qkv = jnp.dot(xn.astype(jnp.bfloat16), w_in_ref[...],
                  preferred_element_type=jnp.float32) + b_in_ref[...]   # (L, 3E)

    # ---- batched multi-head self-attention (heads on the leading/batch dim) ----
    def to_heads(t):                                         # (L, E) -> (H, L, Dh)
        return _swap_leading(t.reshape(L, H, Dh))

    q = to_heads(qkv[:, 0 * E:1 * E]).astype(jnp.bfloat16)   # scale already folded in
    k = to_heads(qkv[:, 1 * E:2 * E]).astype(jnp.bfloat16)
    v = to_heads(qkv[:, 2 * E:3 * E]).astype(jnp.bfloat16)

    s = jnp.einsum("hld,hmd->hlm", q, k,
                   preferred_element_type=jnp.float32)       # (H, L, L) fp32
    # TODO(synk): additive attn_mask would be added to `s` here (module default is None).
    s = s - jnp.max(s, axis=-1, keepdims=True)
    p = jnp.exp(s)
    p = p * pl.reciprocal(jnp.sum(p, axis=-1, keepdims=True), approx=True)
    o = jnp.einsum("hlm,hmd->hld", p.astype(jnp.bfloat16), v,
                   preferred_element_type=jnp.float32)       # (H, L, Dh)
    attn = _swap_leading(o).reshape(L, E)                    # (L, E) fp32

    attn = jnp.dot(attn.astype(jnp.bfloat16), w_out_ref[...],
                   preferred_element_type=jnp.float32) + b_out_ref[...]
    x = x + attn                                             # residual 1

    # ---- ln_2 + MLP (QuickGELU) ----
    xn2 = _layernorm(x, ln2_w_ref[...], ln2_b_ref[...])
    h = jnp.dot(xn2.astype(jnp.bfloat16), w_fc_ref[...],
                preferred_element_type=jnp.float32) + b_fc_ref[...]
    h = h * jax.nn.sigmoid(1.702 * h)                        # QuickGELU (fp32)
    mlp = jnp.dot(h.astype(jnp.bfloat16), w_proj_ref[...],
                  preferred_element_type=jnp.float32) + b_proj_ref[...]

    o_ref[0] = (x + mlp).astype(o_ref.dtype)                 # residual 2


def _replicated_spec(p):
    # Constant index_map -> the block is revisited across the grid (no re-DMA).
    # For very large E, consider pipeline_mode=pl.Buffered(1) / streamed tiles
    # to cut VMEM residency (see TODO at top).
    nd = p.ndim
    return pl.BlockSpec(p.shape, lambda b, nd=nd: (0,) * nd)


def residual_attention_block_nle(x_nle, kparams, *, d_model, n_head):
    """Batch-first entry point: x_nle is (N, L, E). No host-side transposes."""
    N, L, E = x_nle.shape
    assert E == d_model and E % n_head == 0

    param_list = [
        kparams["ln1_w"], kparams["ln1_b"],
        kparams["w_in"], kparams["b_in"],
        kparams["w_out"], kparams["b_out"],
        kparams["ln2_w"], kparams["ln2_b"],
        kparams["w_fc"], kparams["b_fc"],
        kparams["w_proj"], kparams["b_proj"],
    ]

    # Advisory cost estimate so XLA schedules around the custom call sensibly.
    flops = int(N * (24 * L * E * E + 4 * L * L * E))
    transcendentals = int(N * (n_head * L * L + 4 * L * E))
    bytes_accessed = int(2 * N * L * E * x_nle.dtype.itemsize
                         + sum(int(p.size) * p.dtype.itemsize for p in param_list))

    kernel = functools.partial(_block_kernel, n_head=n_head)

    return pl.pallas_call(
        kernel,
        out_shape=jax.ShapeDtypeStruct((N, L, E), x_nle.dtype),
        grid_spec=pltpu.PrefetchScalarGridSpec(
            num_scalar_prefetch=0,
            grid=(N,),
            in_specs=[pl.BlockSpec((1, L, E), lambda b: (b, 0, 0))]
                     + [_replicated_spec(p) for p in param_list],
            out_specs=pl.BlockSpec((1, L, E), lambda b: (b, 0, 0)),
        ),
        compiler_params=pltpu.CompilerParams(
            dimension_semantics=("parallel",),
            vmem_limit_bytes=64 * 1024 * 1024,
        ),
        cost_estimate=pl.CostEstimate(
            flops=flops,
            transcendentals=transcendentals,
            bytes_accessed=bytes_accessed,
        ),
    )(x_nle, *param_list)


def prepare_kernel_params(params, *, d_model, n_head):
    """Fold the 1/sqrt(Dh) attention scale into the q slice of the fused QKV
    projection and cast weight matrices to bf16 (biases / LayerNorm stay f32)."""
    E = d_model
    scale = 1.0 / math.sqrt(E // n_head)
    w_in = params["w_in_t"].at[:, :E].multiply(scale)
    b_in = params["b_in"].at[:, :E].multiply(scale)
    return {
        "ln1_w": params["ln1_w"].astype(jnp.float32),
        "ln1_b": params["ln1_b"].astype(jnp.float32),
        "w_in": w_in.astype(jnp.bfloat16),
        "b_in": b_in.astype(jnp.float32),
        "w_out": params["w_out_t"].astype(jnp.bfloat16),
        "b_out": params["b_out"].astype(jnp.float32),
        "ln2_w": params["ln2_w"].astype(jnp.float32),
        "ln2_b": params["ln2_b"].astype(jnp.float32),
        "w_fc": params["w_fc_t"].astype(jnp.bfloat16),
        "b_fc": params["b_fc"].astype(jnp.float32),
        "w_proj": params["w_proj_t"].astype(jnp.bfloat16),
        "b_proj": params["b_proj"].astype(jnp.float32),
    }


def residual_attention_block(x_lne, params, *, d_model, n_head):
    """Drop-in (L, N, E) wrapper matching the PyTorch module's layout.
    (Prefer residual_attention_block_nle with batch-first data to avoid the
    two HBM round-trip transposes below.)"""
    kparams = prepare_kernel_params(params, d_model=d_model, n_head=n_head)
    x_nle = jnp.transpose(x_lne, (1, 0, 2))                  # (N, L, E)
    out = residual_attention_block_nle(x_nle, kparams, d_model=d_model, n_head=n_head)
    return jnp.transpose(out, (1, 0, 2))                     # back to (L, N, E)


def init_params(key, d_model):
    E = d_model
    ks = jax.random.split(key, 8)
    s = 0.02
    # Stored pre-transposed (in-features, out-features) so the math is x @ W.
    return {
        "ln1_w":    jnp.ones((1, E), jnp.float32),
        "ln1_b":    jnp.zeros((1, E), jnp.float32),
        "w_in_t":   s * jax.random.normal(ks[0], (E, 3 * E), jnp.float32),
        "b_in":     s * jax.random.normal(ks[1], (1, 3 * E), jnp.float32),
        "w_out_t":  s * jax.random.normal(ks[2], (E, E), jnp.float32),
        "b_out":    s * jax.random.normal(ks[3], (1, E), jnp.float32),
        "ln2_w":    jnp.ones((1, E), jnp.float32),
        "ln2_b":    jnp.zeros((1, E), jnp.float32),
        "w_fc_t":   s * jax.random.normal(ks[4], (E, 4 * E), jnp.float32),
        "b_fc":     s * jax.random.normal(ks[5], (1, 4 * E), jnp.float32),
        "w_proj_t": s * jax.random.normal(ks[6], (4 * E, E), jnp.float32),
        "b_proj":   s * jax.random.normal(ks[7], (1, E), jnp.float32),
    }


def reference_block(x_lne, params, *, d_model, n_head):
    """Pure-JAX fp32 reference mirroring the PyTorch forward (for verification)."""
    E, H = d_model, n_head
    Dh = E // H

    def ln(x, w, b, eps=1e-5):
        mu = jnp.mean(x, axis=-1, keepdims=True)
        var = jnp.mean((x - mu) ** 2, axis=-1, keepdims=True)
        return (x - mu) / jnp.sqrt(var + eps) * w[0] + b[0]

    L, N, _ = x_lne.shape
    x = x_lne
    xn = ln(x, params["ln1_w"], params["ln1_b"])
    qkv = xn @ params["w_in_t"] + params["b_in"][0]
    q, k, v = qkv[..., :E], qkv[..., E:2 * E], qkv[..., 2 * E:]

    def split(t):                                    # (L, N, E) -> (N, H, L, Dh)
        return t.reshape(L, N, H, Dh).transpose(1, 2, 0, 3)

    qh, kh, vh = split(q), split(k), split(v)
    s = jnp.einsum("nhld,nhmd->nhlm", qh, kh) / math.sqrt(Dh)
    p = jax.nn.softmax(s, axis=-1)
    o = jnp.einsum("nhlm,nhmd->nhld", p, vh)
    o = o.transpose(2, 0, 1, 3).reshape(L, N, E)
    attn = o @ params["w_out_t"] + params["b_out"][0]
    x = x + attn
    xn2 = ln(x, params["ln2_w"], params["ln2_b"])
    h = xn2 @ params["w_fc_t"] + params["b_fc"][0]
    h = h * jax.nn.sigmoid(1.702 * h)
    y = h @ params["w_proj_t"] + params["b_proj"][0]
    return x + y


if __name__ == "__main__":
    L, N, E, H = 8, 2, 32, 4     # seq, batch, d_model, n_head
    key = jax.random.PRNGKey(0)
    kx, kp = jax.random.split(key)
    x = jax.random.normal(kx, (L, N, E), jnp.float32)
    params = init_params(kp, E)

    out = residual_attention_block(x, params, d_model=E, n_head=H)
    out = jax.block_until_ready(out)

    ref = reference_block(x, params, d_model=E, n_head=H)
    assert out.shape == (L, N, E)
    max_err = float(jnp.max(jnp.abs(out - ref)))
    # bf16 matmul operands vs fp32 reference -> looser tolerance than before.
    assert jnp.allclose(out, ref, rtol=2e-2, atol=2e-2), \
        f"mismatch vs JAX reference (max |err| = {max_err})"

    print("KERNEL_OK")
</pallas_src>

<mosaic_0001>
module attributes {stable_mosaic.version = 11 : i64} {
  func.func @_block_kernel(%arg0: i32, %arg1: memref<1x8x32xf32, #tpu.memory_space<vmem>>, %arg2: memref<1x32xf32, #tpu.memory_space<vmem>>, %arg3: memref<1x32xf32, #tpu.memory_space<vmem>>, %arg4: memref<32x96xbf16, #tpu.memory_space<vmem>>, %arg5: memref<1x96xf32, #tpu.memory_space<vmem>>, %arg6: memref<32x32xbf16, #tpu.memory_space<vmem>>, %arg7: memref<1x32xf32, #tpu.memory_space<vmem>>, %arg8: memref<1x32xf32, #tpu.memory_space<vmem>>, %arg9: memref<1x32xf32, #tpu.memory_space<vmem>>, %arg10: memref<32x128xbf16, #tpu.memory_space<vmem>>, %arg11: memref<1x128xf32, #tpu.memory_space<vmem>>, %arg12: memref<128x32xbf16, #tpu.memory_space<vmem>>, %arg13: memref<1x32xf32, #tpu.memory_space<vmem>>, %arg14: memref<1x8x32xf32, #tpu.memory_space<vmem>>) attributes {dimension_semantics = [#tpu.dimension_semantics<parallel>], iteration_bounds = array<i64: 2>, scalar_prefetch = 0 : i64, scratch_operands = 0 : i64, tpu.core_type = #tpu.core_type<tc>, window_params = [{transform_indices = @transform_0, window_bounds = array<i64: 1, 8, 32>}, {pipeline_mode = #tpu.pipeline_mode<synchronous>, transform_indices = @transform_1, window_bounds = array<i64: 1, 32>}, {pipeline_mode = #tpu.pipeline_mode<synchronous>, transform_indices = @transform_2, window_bounds = array<i64: 1, 32>}, {pipeline_mode = #tpu.pipeline_mode<synchronous>, transform_indices = @transform_3, window_bounds = array<i64: 32, 96>}, {pipeline_mode = #tpu.pipeline_mode<synchronous>, transform_indices = @transform_4, window_bounds = array<i64: 1, 96>}, {pipeline_mode = #tpu.pipeline_mode<synchronous>, transform_indices = @transform_5, window_bounds = array<i64: 32, 32>}, {pipeline_mode = #tpu.pipeline_mode<synchronous>, transform_indices = @transform_6, window_bounds = array<i64: 1, 32>}, {pipeline_mode = #tpu.pipeline_mode<synchronous>, transform_indices = @transform_7, window_bounds = array<i64: 1, 32>}, {pipeline_mode = #tpu.pipeline_mode<synchronous>, transform_indices = @transform_8, window_bounds = array<i64: 1, 32>}, {pipeline_mode = #tpu.pipeline_mode<synchronous>, transform_indices = @transform_9, window_bounds = array<i64: 32, 128>}, {pipeline_mode = #tpu.pipeline_mode<synchronous>, transform_indices = @transform_10, window_bounds = array<i64: 1, 128>}, {pipeline_mode = #tpu.pipeline_mode<synchronous>, transform_indices = @transform_11, window_bounds = array<i64: 128, 32>}, {pipeline_mode = #tpu.pipeline_mode<synchronous>, transform_indices = @transform_12, window_bounds = array<i64: 1, 32>}, {transform_indices = @transform_13, window_bounds = array<i64: 1, 8, 32>}]} {
    %c0 = arith.constant 0 : index
    %c0_0 = arith.constant 0 : index
    %c0_1 = arith.constant 0 : index
    %0 = vector.load %arg1[%c0, %c0_0, %c0_1] : memref<1x8x32xf32, #tpu.memory_space<vmem>>, vector<1x8x32xf32>
    %1 = vector.shape_cast %0 : vector<1x8x32xf32> to vector<8x32xf32>
    %c0_2 = arith.constant 0 : index
    %c0_3 = arith.constant 0 : index
    %2 = vector.load %arg2[%c0_2, %c0_3] : memref<1x32xf32, #tpu.memory_space<vmem>>, vector<1x32xf32>
    %c0_4 = arith.constant 0 : index
    %c0_5 = arith.constant 0 : index
    %3 = vector.load %arg3[%c0_4, %c0_5] : memref<1x32xf32, #tpu.memory_space<vmem>>, vector<1x32xf32>
    %cst = arith.constant dense<0.000000e+00> : vector<8xf32>
    %4 = vector.multi_reduction <add>, %1, %cst [1] : vector<8x32xf32> to vector<8xf32>
    %5 = vector.shape_cast %4 : vector<8xf32> to vector<8x1xf32>
    %cst_6 = arith.constant 3.200000e+01 : f32
    %6 = vector.broadcast %cst_6 : f32 to vector<8x1xf32>
    %7 = arith.divf %5, %6 : vector<8x1xf32>
    %8 = vector.broadcast %7 : vector<8x1xf32> to vector<8x32xf32>
    %9 = arith.subf %1, %8 : vector<8x32xf32>
    %10 = arith.mulf %9, %9 : vector<8x32xf32>
    %cst_7 = arith.constant dense<0.000000e+00> : vector<8xf32>
    %11 = vector.multi_reduction <add>, %10, %cst_7 [1] : vector<8x32xf32> to vector<8xf32>
    %12 = vector.shape_cast %11 : vector<8xf32> to vector<8x1xf32>
    %cst_8 = arith.constant 3.200000e+01 : f32
    %13 = vector.broadcast %cst_8 : f32 to vector<8x1xf32>
    %14 = arith.divf %12, %13 : vector<8x1xf32>
    %15 = vector.broadcast %7 : vector<8x1xf32> to vector<8x32xf32>
    %16 = arith.subf %1, %15 : vector<8x32xf32>
    %cst_9 = arith.constant 9.99999974E-6 : f32
    %17 = vector.broadcast %cst_9 : f32 to vector<8x1xf32>
    %18 = arith.addf %14, %17 : vector<8x1xf32>
    %19 = math.rsqrt %18 : vector<8x1xf32>
    %20 = vector.broadcast %19 : vector<8x1xf32> to vector<8x32xf32>
    %21 = arith.mulf %16, %20 : vector<8x32xf32>
    %22 = vector.broadcast %2 : vector<1x32xf32> to vector<8x32xf32>
    %23 = arith.mulf %21, %22 : vector<8x32xf32>
    %24 = vector.broadcast %3 : vector<1x32xf32> to vector<8x32xf32>
    %25 = arith.addf %23, %24 : vector<8x32xf32>
    %26 = arith.truncf %25 : vector<8x32xf32> to vector<8x32xbf16>
    %c0_10 = arith.constant 0 : index
    %c0_11 = arith.constant 0 : index
    %27 = vector.load %arg4[%c0_10, %c0_11] : memref<32x96xbf16, #tpu.memory_space<vmem>>, vector<32x96xbf16>
    %cst_12 = arith.constant dense<0.000000e+00> : vector<8x96xf32>
    %28 = tpu.matmul %26, %27, %cst_12 {dimension_numbers = #tpu.dot_dimension_numbers<[1], [0], [0], [1], [0, 0, 1, 1], [], []>} : vector<8x32xbf16>, vector<32x96xbf16>, vector<8x96xf32> -> vector<8x96xf32>
    %c0_13 = arith.constant 0 : index
    %c0_14 = arith.constant 0 : index
    %29 = vector.load %arg5[%c0_13, %c0_14] : memref<1x96xf32, #tpu.memory_space<vmem>>, vector<1x96xf32>
    %30 = vector.broadcast %29 : vector<1x96xf32> to vector<8x96xf32>
    %31 = arith.addf %28, %30 : vector<8x96xf32>
    %32 = vector.extract_strided_slice %31 {offsets = [0, 0], sizes = [8, 32], strides = [1, 1]} : vector<8x96xf32> to vector<8x32xf32>
    %33 = vector.shape_cast %32 : vector<8x32xf32> to vector<8x4x8xf32>
    %34 = tpu.transpose %33, [1, 0, 2] : vector<8x4x8xf32> -> vector<4x8x8xf32>
    %35 = arith.truncf %34 : vector<4x8x8xf32> to vector<4x8x8xbf16>
    %36 = vector.extract_strided_slice %31 {offsets = [0, 32], sizes = [8, 32], strides = [1, 1]} : vector<8x96xf32> to vector<8x32xf32>
    %37 = vector.shape_cast %36 : vector<8x32xf32> to vector<8x4x8xf32>
    %38 = tpu.transpose %37, [1, 0, 2] : vector<8x4x8xf32> -> vector<4x8x8xf32>
    %39 = arith.truncf %38 : vector<4x8x8xf32> to vector<4x8x8xbf16>
    %40 = vector.extract_strided_slice %31 {offsets = [0, 64], sizes = [8, 32], strides = [1, 1]} : vector<8x96xf32> to vector<8x32xf32>
    %41 = vector.shape_cast %40 : vector<8x32xf32> to vector<8x4x8xf32>
    %42 = tpu.transpose %41, [1, 0, 2] : vector<8x4x8xf32> -> vector<4x8x8xf32>
    %43 = arith.truncf %42 : vector<4x8x8xf32> to vector<4x8x8xbf16>
    "tpu.trace_start"() <{level = 10 : i32, message = "hld,hmd->hlm"}> : () -> ()
    %cst_15 = arith.constant dense<0.000000e+00> : vector<4x8x8xf32>
    %44 = tpu.matmul %35, %39, %cst_15 {dimension_numbers = #tpu.dot_dimension_numbers<[2], [2], [1], [1], [0, 0, 0, 1, 1, 1], [0], [0]>} : vector<4x8x8xbf16>, vector<4x8x8xbf16>, vector<4x8x8xf32> -> vector<4x8x8xf32>
    "tpu.trace_stop"() : () -> ()
    %cst_16 = arith.constant dense<0xFF800000> : vector<4x8xf32>
    %45 = vector.multi_reduction <maximumf>, %44, %cst_16 [2] : vector<4x8x8xf32> to vector<4x8xf32>
    %46 = vector.shape_cast %45 : vector<4x8xf32> to vector<4x8x1xf32>
    %47 = vector.broadcast %46 : vector<4x8x1xf32> to vector<4x8x8xf32>
    %48 = arith.subf %44, %47 : vector<4x8x8xf32>
    %49 = math.exp %48 : vector<4x8x8xf32>
    %cst_17 = arith.constant dense<0.000000e+00> : vector<4x8xf32>
    %50 = vector.multi_reduction <add>, %49, %cst_17 [2] : vector<4x8x8xf32> to vector<4x8xf32>
    %51 = vector.shape_cast %50 : vector<4x8xf32> to vector<4x8x1xf32>
    %52 = tpu.reciprocal %51 {approx = true} : vector<4x8x1xf32> -> vector<4x8x1xf32>
    %53 = vector.broadcast %52 : vector<4x8x1xf32> to vector<4x8x8xf32>
    %54 = arith.mulf %49, %53 : vector<4x8x8xf32>
    %55 = arith.truncf %54 : vector<4x8x8xf32> to vector<4x8x8xbf16>
    "tpu.trace_start"() <{level = 10 : i32, message = "hlm,hmd->hld"}> : () -> ()
    %cst_18 = arith.constant dense<0.000000e+00> : vector<4x8x8xf32>
    %56 = tpu.matmul %55, %43, %cst_18 {dimension_numbers = #tpu.dot_dimension_numbers<[2], [1], [1], [2], [0, 0, 0, 1, 1, 2], [0], [0]>} : vector<4x8x8xbf16>, vector<4x8x8xbf16>, vector<4x8x8xf32> -> vector<4x8x8xf32>
    "tpu.trace_stop"() : () -> ()
    %57 = tpu.transpose %56, [1, 0, 2] : vector<4x8x8xf32> -> vector<8x4x8xf32>
    %58 = vector.shape_cast %57 : vector<8x4x8xf32> to vector<8x32xf32>
    %59 = arith.truncf %58 : vector<8x32xf32> to vector<8x32xbf16>
    %c0_19 = arith.constant 0 : index
    %c0_20 = arith.constant 0 : index
    %60 = vector.load %arg6[%c0_19, %c0_20] : memref<32x32xbf16, #tpu.memory_space<vmem>>, vector<32x32xbf16>
    %cst_21 = arith.constant dense<0.000000e+00> : vector<8x32xf32>
    %61 = tpu.matmul %59, %60, %cst_21 {dimension_numbers = #tpu.dot_dimension_numbers<[1], [0], [0], [1], [0, 0, 1, 1], [], []>} : vector<8x32xbf16>, vector<32x32xbf16>, vector<8x32xf32> -> vector<8x32xf32>
    %c0_22 = arith.constant 0 : index
    %c0_23 = arith.constant 0 : index
    %62 = vector.load %arg7[%c0_22, %c0_23] : memref<1x32xf32, #tpu.memory_space<vmem>>, vector<1x32xf32>
    %63 = vector.broadcast %62 : vector<1x32xf32> to vector<8x32xf32>
    %64 = arith.addf %61, %63 : vector<8x32xf32>
    %65 = arith.addf %1, %64 : vector<8x32xf32>
    %c0_24 = arith.constant 0 : index
    %c0_25 = arith.constant 0 : index
    %66 = vector.load %arg8[%c0_24, %c0_25] : memref<1x32xf32, #tpu.memory_space<vmem>>, vector<1x32xf32>
    %c0_26 = arith.constant 0 : index
    %c0_27 = arith.constant 0 : index
    %67 = vector.load %arg9[%c0_26, %c0_27] : memref<1x32xf32, #tpu.memory_space<vmem>>, vector<1x32xf32>
    %cst_28 = arith.constant dense<0.000000e+00> : vector<8xf32>
    %68 = vector.multi_reduction <add>, %65, %cst_28 [1] : vector<8x32xf32> to vector<8xf32>
    %69 = vector.shape_cast %68 : vector<8xf32> to vector<8x1xf32>
    %cst_29 = arith.constant 3.200000e+01 : f32
    %70 = vector.broadcast %cst_29 : f32 to vector<8x1xf32>
    %71 = arith.divf %69, %70 : vector<8x1xf32>
    %72 = vector.broadcast %71 : vector<8x1xf32> to vector<8x32xf32>
    %73 = arith.subf %65, %72 : vector<8x32xf32>
    %74 = arith.mulf %73, %73 : vector<8x32xf32>
    %cst_30 = arith.constant dense<0.000000e+00> : vector<8xf32>
    %75 = vector.multi_reduction <add>, %74, %cst_30 [1] : vector<8x32xf32> to vector<8xf32>
    %76 = vector.shape_cast %75 : vector<8xf32> to vector<8x1xf32>
    %cst_31 = arith.constant 3.200000e+01 : f32
    %77 = vector.broadcast %cst_31 : f32 to vector<8x1xf32>
    %78 = arith.divf %76, %77 : vector<8x1xf32>
    %79 = vector.broadcast %71 : vector<8x1xf32> to vector<8x32xf32>
    %80 = arith.subf %65, %79 : vector<8x32xf32>
    %cst_32 = arith.constant 9.99999974E-6 : f32
    %81 = vector.broadcast %cst_32 : f32 to vector<8x1xf32>
    %82 = arith.addf %78, %81 : vector<8x1xf32>
    %83 = math.rsqrt %82 : vector<8x1xf32>
    %84 = vector.broadcast %83 : vector<8x1xf32> to vector<8x32xf32>
    %85 = arith.mulf %80, %84 : vector<8x32xf32>
    %86 = vector.broadcast %66 : vector<1x32xf32> to vector<8x32xf32>
    %87 = arith.mulf %85, %86 : vector<8x32xf32>
    %88 = vector.broadcast %67 : vector<1x32xf32> to vector<8x32xf32>
    %89 = arith.addf %87, %88 : vector<8x32xf32>
    %90 = arith.truncf %89 : vector<8x32xf32> to vector<8x32xbf16>
    %c0_33 = arith.constant 0 : index
    %c0_34 = arith.constant 0 : index
    %91 = vector.load %arg10[%c0_33, %c0_34] : memref<32x128xbf16, #tpu.memory_space<vmem>>, vector<32x128xbf16>
    %cst_35 = arith.constant dense<0.000000e+00> : vector<8x128xf32>
    %92 = tpu.matmul %90, %91, %cst_35 {dimension_numbers = #tpu.dot_dimension_numbers<[1], [0], [0], [1], [0, 0, 1, 1], [], []>} : vector<8x32xbf16>, vector<32x128xbf16>, vector<8x128xf32> -> vector<8x128xf32>
    %c0_36 = arith.constant 0 : index
    %c0_37 = arith.constant 0 : index
    %93 = vector.load %arg11[%c0_36, %c0_37] : memref<1x128xf32, #tpu.memory_space<vmem>>, vector<1x128xf32>
    %94 = vector.broadcast %93 : vector<1x128xf32> to vector<8x128xf32>
    %95 = arith.addf %92, %94 : vector<8x128xf32>
    %cst_38 = arith.constant 1.702000e+00 : f32
    %96 = vector.broadcast %cst_38 : f32 to vector<8x128xf32>
    %97 = arith.mulf %96, %95 : vector<8x128xf32>
    %98 = arith.negf %97 : vector<8x128xf32>
    %99 = math.exp %98 : vector<8x128xf32>
    %cst_39 = arith.constant 1.000000e+00 : f32
    %100 = vector.broadcast %cst_39 : f32 to vector<8x128xf32>
    %101 = arith.addf %100, %99 : vector<8x128xf32>
    %102 = arith.divf %100, %101 : vector<8x128xf32>
    %103 = arith.mulf %95, %102 : vector<8x128xf32>
    %104 = arith.truncf %103 : vector<8x128xf32> to vector<8x128xbf16>
    %c0_40 = arith.constant 0 : index
    %c0_41 = arith.constant 0 : index
    %105 = vector.load %arg12[%c0_40, %c0_41] : memref<128x32xbf16, #tpu.memory_space<vmem>>, vector<128x32xbf16>
    %cst_42 = arith.constant dense<0.000000e+00> : vector<8x32xf32>
    %106 = tpu.matmul %104, %105, %cst_42 {dimension_numbers = #tpu.dot_dimension_numbers<[1], [0], [0], [1], [0, 0, 1, 1], [], []>} : vector<8x128xbf16>, vector<128x32xbf16>, vector<8x32xf32> -> vector<8x32xf32>
    %c0_43 = arith.constant 0 : index
    %c0_44 = arith.constant 0 : index
    %107 = vector.load %arg13[%c0_43, %c0_44] : memref<1x32xf32, #tpu.memory_space<vmem>>, vector<1x32xf32>
    %108 = vector.broadcast %107 : vector<1x32xf32> to vector<8x32xf32>
    %109 = arith.addf %106, %108 : vector<8x32xf32>
    %110 = arith.addf %65, %109 : vector<8x32xf32>
    %c0_45 = arith.constant 0 : index
    %c0_46 = arith.constant 0 : index
    %c0_47 = arith.constant 0 : index
    %111 = vector.load %arg14[%c0_45, %c0_46, %c0_47] : memref<1x8x32xf32, #tpu.memory_space<vmem>>, vector<1x8x32xf32>
    %112 = vector.shape_cast %111 : vector<1x8x32xf32> to vector<8x32xf32>
    %113 = vector.shape_cast %110 : vector<8x32xf32> to vector<1x8x32xf32>
    tpu.vector_store %arg14[%c0_45, %c0_46, %c0_47], %113 {strides = array<i32>} : memref<1x8x32xf32, #tpu.memory_space<vmem>>, vector<1x8x32xf32>,
    return
  }
  func.func @transform_0(%arg0: i32) -> (i32, i32, i32) {
    %c0_i32 = arith.constant 0 : i32
    %c0_i32_0 = arith.constant 0 : i32
    %c0_i32_1 = arith.constant 0 : i32
    return %arg0, %c0_i32, %c0_i32_0 : i32, i32, i32
  }
  func.func @transform_1(%arg0: i32) -> (i32, i32) {
    %c0_i32 = arith.constant 0 : i32
    %c0_i32_0 = arith.constant 0 : i32
    %c0_i32_1 = arith.constant 0 : i32
    return %c0_i32, %c0_i32_0 : i32, i32
  }
  func.func @transform_2(%arg0: i32) -> (i32, i32) {
    %c0_i32 = arith.constant 0 : i32
    %c0_i32_0 = arith.constant 0 : i32
    %c0_i32_1 = arith.constant 0 : i32
    return %c0_i32, %c0_i32_0 : i32, i32
  }
  func.func @transform_3(%arg0: i32) -> (i32, i32) {
    %c0_i32 = arith.constant 0 : i32
    %c0_i32_0 = arith.constant 0 : i32
    %c0_i32_1 = arith.constant 0 : i32
    return %c0_i32, %c0_i32_0 : i32, i32
  }
  func.func @transform_4(%arg0: i32) -> (i32, i32) {
    %c0_i32 = arith.constant 0 : i32
    %c0_i32_0 = arith.constant 0 : i32
    %c0_i32_1 = arith.constant 0 : i32
    return %c0_i32, %c0_i32_0 : i32, i32
  }
  func.func @transform_5(%arg0: i32) -> (i32, i32) {
    %c0_i32 = arith.constant 0 : i32
    %c0_i32_0 = arith.constant 0 : i32
    %c0_i32_1 = arith.constant 0 : i32
    return %c0_i32, %c0_i32_0 : i32, i32
  }
  func.func @transform_6(%arg0: i32) -> (i32, i32) {
    %c0_i32 = arith.constant 0 : i32
    %c0_i32_0 = arith.constant 0 : i32
    %c0_i32_1 = arith.constant 0 : i32
    return %c0_i32, %c0_i32_0 : i32, i32
  }
  func.func @transform_7(%arg0: i32) -> (i32, i32) {
    %c0_i32 = arith.constant 0 : i32
    %c0_i32_0 = arith.constant 0 : i32
    %c0_i32_1 = arith.constant 0 : i32
    return %c0_i32, %c0_i32_0 : i32, i32
  }
  func.func @transform_8(%arg0: i32) -> (i32, i32) {
    %c0_i32 = arith.constant 0 : i32
    %c0_i32_0 = arith.constant 0 : i32
    %c0_i32_1 = arith.constant 0 : i32
    return %c0_i32, %c0_i32_0 : i32, i32
  }
  func.func @transform_9(%arg0: i32) -> (i32, i32) {
    %c0_i32 = arith.constant 0 : i32
    %c0_i32_0 = arith.constant 0 : i32
    %c0_i32_1 = arith.constant 0 : i32
    return %c0_i32, %c0_i32_0 : i32, i32
  }
  func.func @transform_10(%arg0: i32) -> (i32, i32) {
    %c0_i32 = arith.constant 0 : i32
    %c0_i32_0 = arith.constant 0 : i32
    %c0_i32_1 = arith.constant 0 : i32
    return %c0_i32, %c0_i32_0 : i32, i32
  }
  func.func @transform_11(%arg0: i32) -> (i32, i32) {
    %c0_i32 = arith.constant 0 : i32
    %c0_i32_0 = arith.constant 0 : i32
    %c0_i32_1 = arith.constant 0 : i32
    return %c0_i32, %c0_i32_0 : i32, i32
  }
  func.func @transform_12(%arg0: i32) -> (i32, i32) {
    %c0_i32 = arith.constant 0 : i32
    %c0_i32_0 = arith.constant 0 : i32
    %c0_i32_1 = arith.constant 0 : i32
    return %c0_i32, %c0_i32_0 : i32, i32
  }
  func.func @transform_13(%arg0: i32) -> (i32, i32, i32) {
    %c0_i32 = arith.constant 0 : i32
    %c0_i32_0 = arith.constant 0 : i32
    %c0_i32_1 = arith.constant 0 : i32
    return %arg0, %c0_i32, %c0_i32_0 : i32, i32, i32
  }
}

</mosaic_0001>

<bundles_post_ra>
// kernel: tpu_custom_call.1
= control target key start
LH: loop header
LB: loop body
LE: loop exit
PB: predicated region body
PF: predicated region fallthrough
CT: control target
= control target key end

     0   :  { %s2237_s0 = inlined_call_operand.vmem [shape: f32[2,8,32], index: 0, kind: input, shape index: {}]   ;;  %s2238_s1 = inlined_call_operand.vmem [shape: f32[1,32], index: 1, kind: input, shape index: {}]   ;;  %s2239_s2 = inlined_call_operand.vmem [shape: f32[1,32], index: 2, kind: input, shape index: {}]   ;;  %s2240_s3 = inlined_call_operand.vmem [shape: bf16[32,96], index: 3, kind: input, shape index: {}]   ;;  %s2241_s4 = inlined_call_operand.vmem [shape: f32[1,96], index: 4, kind: input, shape index: {}]   ;;  %s2242_s5 = inlined_call_operand.vmem [shape: bf16[32,32], index: 5, kind: input, shape index: {}]   ;;  %s2243_s6 = inlined_call_operand.vmem [shape: f32[1,32], index: 6, kind: input, shape index: {}]   ;;  %s2244_s7 = inlined_call_operand.vmem [shape: f32[1,32], index: 7, kind: input, shape index: {}]   ;;  %s2245_s8 = inlined_call_operand.vmem [shape: f32[1,32], index: 8, kind: input, shape index: {}]   ;;  %s2246_s9 = inlined_call_operand.vmem [shape: bf16[32,128], index: 9, kind: input, shape index: {}]   ;;  %s2247_s10 = inlined_call_operand.vmem [shape: f32[1,128], index: 10, kind: input, shape index: {}]   ;;  %s2248_s11 = inlined_call_operand.vmem [shape: bf16[128,32], index: 11, kind: input, shape index: {}]   ;;  %s2249_s12 = inlined_call_operand.vmem [shape: f32[1,32], index: 12, kind: input, shape index: {}]   ;;  %s2250_s13 = inlined_call_operand.hbm [shape: f32[2,8,32], index: 13, kind: output, shape index: {}]  }
   0x1   :  { %2251 = sst [smem:[#allocation5_spill]] %s2237_s0 }
   0x2   :  { %2252 = sst [smem:[#allocation6_spill]] %s2238_s1 }
   0x3   :  { %2253 = sst [smem:[#allocation7_spill]] %s2239_s2 }
   0x4   :  { %2254 = sst [smem:[#allocation8_spill]] %s2240_s3 }
   0x5   :  { %18 = vsyncpa [#allocation3], 0 }
   0x6   :  { %20 = vsyncpa [#allocation3 + $0x1], 0  ;;  %s1849_s25 = smov 0   ;;  %s1851_s26 = smov 0  }
   0x7   :  { %s1853_s27 = smov 0   ;;  %s1855_s28 = smov 0  }
   0x8 LB: > { %s1870_s29 = sadd.s32 4294967295, %s1766_s28   ;;  %s1508_s30 = sadd.s32 4294967294, %s1766_s28   ;;  %s1766_s28 = sphi %s1855_s28, %s2264_s28   ;;  %s1762_s27 = sphi %s1853_s27, %s2263_s27   ;;  %s1758_s26 = sphi %s1851_s26, %s2262_s26   ;;  %s1754_s25 = sphi %s1849_s25, %s2261_s25  }
   0x9   : > { %s1874_s14 = sadd.s32 1, %s1766_s28   ;;  %s311_s15 = sadd.s32 1, %s1762_s27 }
   0xa   : > { %s308_s16 = ssub.s32 %s1766_s28, %s1874_s14  ;;  %p321_p0 = scmp.ne.s32.totalorder %s1762_s27, %s1758_s26 }
   0xb   : > { %p309_p1 = scmp.eq.s32.totalorder %s308_s16, 0  ;;  %p322_p2 = scmp.eq.s32.totalorder %s1870_s29, 1 }
   0xc   : > { %p327_p3 = scmp.ne.s32.totalorder %s1758_s26, %s1754_s25  ;;  %p328_p4 = scmp.eq.s32.totalorder %s1508_s30, 1 }
   0xd   : > { %s1885_s17 = scalar_select %p309_p1, %s1762_s27, %s311_s15  }
   0xe   : > { %p1887_p5 = por %p322_p2, %p321_p0  ;;  %p1891_p6 = por %p328_p4, %p327_p3 }
   0xf   : > { %p1511_p7 = scmp.ge.s32.totalorder %s1766_s28, 1  ;;  %p389_p8 = scmp.lt.s32.totalorder %s1766_s28, 3 }
  0x11   : > { %p390_p9 = pnand %p1511_p7, %p389_p8 }
  0x12   : > { %p432_p10 = scmp.lt.s32.totalorder (!%p390_p9), %s1870_s29, 1  ;;  %s2257_s0 = sld [smem:[#allocation5_spill]] (!%p390_p9) }
  0x13   : > { %393 = sbr.rel (%p390_p9) target bundleno = 2089 (0x829), region = 72  ;;  %s2258_s3 = sld [smem:[#allocation8_spill]] (!%p390_p9) }
  0x14   : > { %s2259_s1 = sld [smem:[#allocation6_spill]] (!%p390_p9)  ;;  %s1769_s16 = smov (!%p390_p9), 104  }
  0x15   : > { %s2260_s2 = sld [smem:[#allocation7_spill]] (!%p390_p9)  ;;  %s1772_s22 = smov (!%p390_p9), 96  }
  0x16   : > { %s1775_s23 = smov (!%p390_p9), 64   ;;  %s1777_s30 = smov (!%p390_p9), 16  }
  0x17   : > { %s1778_s15 = smov (!%p390_p9), 24  }
  0x18   : > { %s433_s20 = scalar_select %p432_p10, %s1870_s29, 1  ;;  %vm440_vm0 = vcmask 261120   ;;  %v1768_v2 = vmov 32.0   ;;  %v1672_v32 = vld [vmem:[%s2241_s4] ss:$0 sm:$0xff]  ;;  %vm526_vm5 = vcmask 1047556  }
  0x19   : > { %1678 = vrcp.f32 %v1768_v2  ;;  %v1587_v14 = vld [vmem:[%s2258_s3 + $0x8] sm:$0xff]  ;;  %v1586_v15 = vld [vmem:[%s2258_s3] sm:$0xff]  ;;  %v1773_v42 = vmov 1983009808   ;;  %v1774_v56 = vmov 1934713408  }
  0x1a   : > { %s1513_s21 = sshll.u32 %s433_s20, 3  ;;  %508 = vmatpush.bf16.msra.mxu0 %v1587_v14  ;;  %v1670_v25 = vld [vmem:[%s2259_s1] ss:$0 sm:$0xff]  ;;  %s1770_s20 = smov 120   ;;  %v531_v43 = vunpack.c.l.s4 %v1773_v42  ;;  %v555_v57 = vunpack.c.l.s4 %v1774_v56  ;;  %vm892_vm6 = vcmask 64512   ;;  %vm1020_vm7 = vcmask 1043456  }
  0x1b   : > { %s435_s24 = scalar_lea.vmem %s2257_s0, %s1513_s21  ;;  %v1671_v28 = vld [vmem:[%s2260_s2] ss:$0 sm:$0xff]  ;;  %s1771_s21 = smov 112   ;;  %vm1217_vm8 = vcmask 130048   ;;  %vm1219_vm9 = vcmask 195584  }
  0x1c   : > { %v1902_v0 = vld [vmem:[%s435_s24] sm:$0xff]  ;;  %v1936_v47 = vunpack.c.0.s8 %v531_v43  ;;  %v1946_v62 = vunpack.c.0.s8 %v555_v57  ;;  %s1776_s24 = smov 8   ;;  %s429_s1 = sand.u32 1, %s1758_s26  }
  0x1d   : > { %v441_v1 = vsel %vm440_vm0, %v1902_v0, 0.0 }
  0x1e   : > { %442 = vadd.xlane.f32.xlu0 %v441_v1  ;;  %509 = vmatpush.bf16.msra.mxu0 %v1586_v15 }
  0x1f   : > { %v1679_v3 = vpop.eup %1678 }
  0x20   : > { %v445_v4 = vmul.f32 32.0, %v1679_v3  ;;  %vm449_vm1 = vweird.f32 %v1679_v3 }
  0x22   : > { %v446_v5 = vsub.f32 1.0, %v445_v4 }
  0x24   : > { %v447_v6 = vmul.f32 %v1679_v3, %v446_v5 }
  0x26   : > { %v448_v7 = vadd.f32 %v1679_v3, %v447_v6 }
  0x28   : > { %v1906_v8 = vsel %vm449_vm1, %v1679_v3, %v448_v7 }
  0x91   : > { %v443_v9 = vpop.xlane.xlu0 %442 }
  0x92   : > { %v451_v10 = vmul.f32 %v1906_v8, %v443_v9 }
  0x94   : > { %v452_v11 = vsub.f32 %v1902_v0, %v451_v10 }
  0x96   : > { %v453_v12 = vmul.f32 %v452_v11, %v452_v11 }
  0x98   : > { %v454_v13 = vsel %vm440_vm0, %v453_v12, 0.0 }
  0x99   : > { %455 = vadd.xlane.f32.xlu0 %v454_v13 }
 0x10c   : > { %v456_v16 = vpop.xlane.xlu0 %455 }
 0x10d   : > { %v457_v17 = vmul.f32 %v456_v16, %v1906_v8 }
 0x10f   : > { %v458_v18 = vadd.f32 1e-05, %v457_v17 }
 0x111   : > { %1680 = vrsqrt.f32 %v458_v18  ;;  %vm465_vm3 = vweird.f32 %v458_v18 }
 0x117   : > { %v1681_v19 = vpop.eup %1680 }
 0x118   : > { %v460_v20 = vmul.f32 %v1681_v19, %v458_v18  ;;  %vm466_vm2 = vweird.f32 %v1681_v19 }
 0x119   : > { %vm467_vm4 = vmor %vm465_vm3, %vm466_vm2 }
 0x11a   : > { %v461_v21 = vmul.f32 %v1681_v19, %v460_v20 }
 0x11c   : > { %v462_v22 = vmul.f32 0.5, %v461_v21 }
 0x11e   : > { %v463_v23 = vsub.f32 1.5, %v462_v22 }
 0x120   : > { %v464_v24 = vmul.f32 %v1681_v19, %v463_v23 }
 0x122   : > { %v468_v26 = vsel %vm467_vm4, %v1681_v19, %v464_v24 }
 0x123   : > { %v469_v27 = vmul.f32 %v468_v26, %v452_v11 }
 0x125   : > { %v473_v29 = vmul.f32 %v1670_v25, %v469_v27 }
 0x127   : > { %v477_v30 = vadd.f32 %v1671_v28, %v473_v29 }
 0x129   : > { %v478_v31 = vpack.c.bf16 %v477_v30, %v477_v30 }
 0x12b   : > { %1522 = vmatmul.msk.bf16.vlgmr.msra.gmra.mxu0 %vm440_vm0, %v478_v31 }
 0x1a8   : > { %v511_v33 = vpop.f32.mrf.mxu0 }
 0x1a9   : > { %v512_v34 = vadd.f32 %v1672_v32, %v511_v33 }
 0x1ab   : > { %522 = vrot.lane.b32.xlu2 %v512_v34, %s1769_s16  ;;  %516 = vrot.lane.b32.xlu1 %v512_v34, %s1770_s20  ;;  %v528_v44 = vrot.slane %v512_v34, 4 }
 0x1b0   : > { %v513_v35 = vpop.f32.mrf.mxu0 }
 0x1b3   : > { %519 = vrot.lane.b32.xlu1 %v512_v34, %s1771_s21 }
 0x205   : > { %v523_v38 = vpop.permute.xlu2 %522 }
 0x206   : > { %v538_v51 = vrot.slane %v523_v38, 4 }
 0x21d   : > { %v517_v36 = vpop.permute.xlu1 %516 }
 0x21e   : > { %v1928_v37 = vpack.i.bf16 %v517_v36, %v512_v34  ;;  %v540_v48 = vrot.slane %v517_v36, 4  ;;  %v539_v52 = vsel %vm526_vm5, %v538_v51, %v517_v36 }
 0x21f   : > { %v545_v58 = vperm.slane %v539_v52, %v1936_v47 }
 0x220   : > { %1651 = vrot.lane.b32.xlu2 %v1928_v37, %s1772_s22  ;;  %v541_v53 = vsel %vm526_vm5, %v523_v38, %v540_v48 }
 0x221   : > { %v549_v59 = vperm.slane %v541_v53, %v1936_v47  ;;  %v550_v63 = vrot.slane %v545_v58, 4 }
 0x223   : > { %v562_v1 = vrot.slane %v549_v59, 4 }
 0x225   : > { %v520_v39 = vpop.permute.xlu1 %519 }
 0x226   : > { %v1931_v40 = vpack.i.bf16 %v523_v38, %v520_v39  ;;  %v525_v41 = vrot.slane %v520_v39, 4  ;;  %v529_v46 = vsel %vm526_vm5, %v520_v39, %v528_v44 }
 0x227   : > { %v537_v50 = vperm.slane %v529_v46, %v1936_v47 }
 0x228   : > { %1656 = vrot.lane.b32.xlu0 %v1931_v40, %s1772_s22  ;;  %v527_v45 = vsel %vm526_vm5, %v525_v41, %v512_v34 }
 0x229   : > { %v533_v49 = vperm.slane %v527_v45, %v1936_v47  ;;  %v564_v55 = vrot.slane %v537_v50, 4  ;;  %v563_v6 = vsel %vm526_vm5, %v562_v1, %v537_v50 }
 0x22a   : > { %v569_v11 = vperm.slane %v563_v6, %v1946_v62 }
 0x22b   : > { %v552_v54 = vrot.slane %v533_v49, 4  ;;  %v565_v61 = vsel %vm526_vm5, %v549_v59, %v564_v55  ;;  %v551_v5 = vsel %vm526_vm5, %v550_v63, %v533_v49 }
 0x22c   : > { %v573_v3 = vperm.slane %v565_v61, %v1946_v62  ;;  %v557_v10 = vperm.slane %v551_v5, %v1946_v62  ;;  %v578_v20 = vrot.slane %v569_v11, 4 }
 0x22d   : > { %v553_v60 = vsel %vm526_vm5, %v545_v58, %v552_v54 }
 0x22e   : > { %v561_v2 = vperm.slane %v553_v60, %v1946_v62  ;;  %v580_v13 = vrot.slane %v573_v3, 4  ;;  %v574_v19 = vrot.slane %v557_v10, 4  ;;  %v579_v39 = vsel %vm526_vm5, 0.0, %v578_v20 }
 0x230   : > { %v576_v12 = vrot.slane %v561_v2, 4  ;;  %v581_v21 = vsel %vm526_vm5, 0.0, %v580_v13  ;;  %v593_v27 = vsel %vm526_vm5, %v580_v13, %v569_v11  ;;  %v575_v41 = vsel %vm526_vm5, 0.0, %v574_v19 }
 0x231   : > { %v598_v30 = vrot.slane %v581_v21, 4  ;;  %v597_v48 = vperm.slane %v593_v27, %v1936_v47 }
 0x232   : > { %v577_v22 = vsel %vm526_vm5, 0.0, %v576_v12  ;;  %v582_v42 = vsel %vm526_vm5, %v576_v12, %v557_v10 }
 0x233   : > { %v587_v33 = vrot.slane %v577_v22, 4  ;;  %v599_v51 = vsel %vm526_vm5, %v598_v30, %v579_v39  ;;  %v586_v54 = vperm.slane %v582_v42, %v1936_v47  ;;  %v618_v2 = vrot.slane %v597_v48, 4 }
 0x234   : > { %v603_v60 = vperm.slane %v599_v51, %v1936_v47 }
 0x235   : > { %v588_v55 = vsel %vm526_vm5, %v587_v33, %v575_v41  ;;  %v606_v6 = vrot.slane %v586_v54, 4 }
 0x236   : > { %v592_v5 = vperm.slane %v588_v55, %v1936_v47  ;;  %v619_v22 = vsel %vm526_vm5, %v603_v60, %v618_v2 }
 0x238   : > { %v607_v21 = vsel %vm526_vm5, %v592_v5, %v606_v6 }
 0x27a   : > { %v1652_v4 = vpop.permute.xlu2 %1651 }
 0x27b   : > { %v1654_v7 = vunpack.i.h.bf16 %v1652_v4  ;;  %v1653_v9 = vunpack.i.l.bf16 %v1652_v4 }
 0x27d   : > { %v666_v15 = vrot.slane %v1654_v7, 4  ;;  %v654_v16 = vrot.slane %v1653_v9, 4 }
 0x29a   : > { %v1657_v14 = vpop.permute.xlu0 %1656 }
 0x29b   : > { %v1659_v17 = vunpack.i.h.bf16 %v1657_v14  ;;  %v1658_v18 = vunpack.i.l.bf16 %v1657_v14 }
 0x29d   : > { %v664_v23 = vrot.slane %v1659_v17, 4  ;;  %v667_v24 = vsel %vm526_vm5, %v1659_v17, %v666_v15  ;;  %v652_v25 = vrot.slane %v1658_v18, 4  ;;  %v655_v26 = vsel %vm526_vm5, %v1658_v18, %v654_v16 }
 0x29e   : > { %v675_v28 = vperm.slane %v667_v24, %v1936_v47  ;;  %v663_v29 = vperm.slane %v655_v26, %v1936_v47  ;;  %v616_v15 = vrot.slane %v603_v60, 4  ;;  %v604_v26 = vrot.slane %v592_v5, 4 }
 0x29f   : > { %v665_v31 = vsel %vm526_vm5, %v664_v23, %v1654_v7  ;;  %v653_v32 = vsel %vm526_vm5, %v652_v25, %v1653_v9 }
 0x2a0   : > { %v671_v34 = vperm.slane %v665_v31, %v1936_v47  ;;  %v688_v35 = vrot.slane %v675_v28, 4  ;;  %v659_v36 = vperm.slane %v653_v32, %v1936_v47  ;;  %v690_v38 = vrot.slane %v663_v29, 4 }
 0x2a1   : > { %v627_v32 = vperm.slane %v619_v22, %v1946_v62  ;;  %v605_v39 = vsel %vm526_vm5, %v604_v26, %v586_v54 }
 0x2a2   : > { %v676_v43 = vrot.slane %v671_v34, 4  ;;  %v678_v44 = vrot.slane %v659_v36, 4  ;;  %v689_v45 = vsel %vm526_vm5, %v688_v35, %v663_v29  ;;  %v691_v46 = vsel %vm526_vm5, %v675_v28, %v690_v38 }
 0x2a3   : > { %v695_v49 = vperm.slane %v689_v45, %v1946_v62  ;;  %v699_v50 = vperm.slane %v691_v46, %v1946_v62  ;;  %v617_v28 = vsel %vm526_vm5, %v616_v15, %v597_v48  ;;  %v632_v48 = vrot.slane %v627_v32, 4 }
 0x2a4   : > { %v677_v52 = vsel %vm526_vm5, %v676_v43, %v659_v36  ;;  %v679_v53 = vsel %vm526_vm5, %v671_v34, %v678_v44  ;;  %v615_v36 = vperm.slane %v607_v21, %v1946_v62  ;;  %v623_v41 = vperm.slane %v617_v28, %v1946_v62 }
 0x2a5   : > { %v683_v56 = vperm.slane %v677_v52, %v1946_v62  ;;  %v687_v57 = vperm.slane %v679_v53, %v1946_v62  ;;  %v704_v58 = vrot.slane %v695_v49, 4  ;;  %v706_v59 = vrot.slane %v699_v50, 4 }
 0x2a6   : > { %v611_v52 = vperm.slane %v605_v39, %v1946_v62 }
 0x2a7   : > { %v700_v61 = vrot.slane %v683_v56, 4  ;;  %v702_v63 = vrot.slane %v687_v57, 4  ;;  %v707_v1 = vsel %vm526_vm5, 0.0, %v706_v59  ;;  %v719_v4 = vsel %vm526_vm5, %v706_v59, %v695_v49 }
 0x2a8   : > { %v724_v3 = vrot.slane %v707_v1, 4  ;;  %v705_v9 = vsel %vm526_vm5, 0.0, %v704_v58  ;;  %v723_v11 = vperm.slane %v719_v4, %v1936_v47  ;;  %v634_v57 = vrot.slane %v615_v36, 4 }
 0x2a9   : > { %v703_v7 = vsel %vm526_vm5, 0.0, %v702_v63  ;;  %v708_v10 = vsel %vm526_vm5, %v702_v63, %v683_v56  ;;  %v701_v16 = vsel %vm526_vm5, 0.0, %v700_v61  ;;  %v628_v58 = vrot.slane %v623_v41, 4 }
 0x2aa   : > { %v712_v12 = vperm.slane %v708_v10, %v1936_v47  ;;  %v713_v13 = vrot.slane %v703_v7, 4  ;;  %v725_v14 = vsel %vm526_vm5, %v724_v3, %v705_v9  ;;  %v744_v18 = vrot.slane %v723_v11, 4 }
 0x2ab   : > { %v729_v17 = vperm.slane %v725_v14, %v1936_v47  ;;  %v633_v63 = vsel %vm526_vm5, %v632_v48, %v615_v36  ;;  %v630_v1 = vrot.slane %v611_v52, 4  ;;  %v629_v3 = vsel %vm526_vm5, %v628_v58, %v611_v52 }
 0x2ac   : > { %v714_v19 = vsel %vm526_vm5, %v713_v13, %v701_v16  ;;  %v732_v20 = vrot.slane %v712_v12, 4  ;;  %v635_v4 = vsel %vm526_vm5, %v627_v32, %v634_v57  ;;  %v638_v5 = vpack.c.bf16 %v633_v63, %v633_v63 }
 0x2ad   : > { %v718_v23 = vperm.slane %v714_v19, %v1936_v47  ;;  %v745_v24 = vsel %vm526_vm5, %v729_v17, %v744_v18  ;;  %v742_v25 = vrot.slane %v729_v17, 4  ;;  %v631_v6 = vsel %vm526_vm5, %v623_v41, %v630_v1 }
 0x2ae   : > { %v753_v27 = vperm.slane %v745_v24, %v1946_v62  ;;  %v636_v7 = vpack.c.bf16 %v629_v3, %v629_v3  ;;  %v639_v9 = vpack.c.bf16 %v635_v4, %v635_v4  ;;  %v637_v10 = vpack.c.bf16 %v631_v6, %v631_v6 }
 0x2af   : > { %v733_v29 = vsel %vm526_vm5, %v718_v23, %v732_v20  ;;  %v730_v30 = vrot.slane %v718_v23, 4  ;;  %v743_v31 = vsel %vm526_vm5, %v742_v25, %v723_v11 }
 0x2b0   : > { %v741_v33 = vperm.slane %v733_v29, %v1946_v62  ;;  %v758_v34 = vrot.slane %v753_v27, 4  ;;  %v749_v35 = vperm.slane %v743_v31, %v1946_v62 }
 0x2b1   : > { %v731_v38 = vsel %vm526_vm5, %v730_v30, %v712_v12 }
 0x2b2   : > { %v759_v42 = vsel %vm526_vm5, %v758_v34, %v741_v33  ;;  %v737_v43 = vperm.slane %v731_v38, %v1946_v62  ;;  %v754_v44 = vrot.slane %v749_v35, 4  ;;  %v760_v45 = vrot.slane %v741_v33, 4 }
 0x2b3   : > { %v764_v46 = vpack.c.bf16 %v759_v42, %v759_v42 }
 0x2b4   : > { %v755_v49 = vsel %vm526_vm5, %v754_v44, %v737_v43  ;;  %v761_v50 = vsel %vm526_vm5, %v753_v27, %v760_v45  ;;  %v756_v51 = vrot.slane %v737_v43, 4 }
 0x2b5   : > { %v935_v53 = vsel %vm892_vm6, %v764_v46, 0  ;;  %v762_v54 = vpack.c.bf16 %v755_v49, %v755_v49  ;;  %v765_v55 = vpack.c.bf16 %v761_v50, %v761_v50 }
 0x2b6   : > { %944 = vmatpush.bf16.xpose.msra.mxu3 %v935_v53  ;;  %v757_v56 = vsel %vm526_vm5, %v749_v35, %v756_v51 }
 0x2b7   : > { %v897_v59 = vsel %vm892_vm6, %v762_v54, 0  ;;  %v954_v60 = vsel %vm892_vm6, %v765_v55, 0  ;;  %v763_v61 = vpack.c.bf16 %v757_v56, %v757_v56 }
 0x2b8   : > { %906 = vmatpush.bf16.xpose.msra.mxu1 %v897_v59  ;;  %963 = vmatpush.bf16.xpose.msrb.mxu0 %v954_v60 }
 0x2b9   : > { %v916_v2 = vsel %vm892_vm6, %v763_v61, 0 }
 0x2ba   : > { %925 = vmatpush.bf16.xpose.msra.mxu2 %v916_v2 }
 0x2bd   : > { %1525 = vmatmul.msk.bf16.vlgmr.msra.gmra.mxu3 %vm892_vm6, %v638_v5 }
 0x2bf   : > { %1523 = vmatmul.msk.bf16.vlgmr.msra.gmra.mxu1 %vm892_vm6, %v636_v7  ;;  %1526 = vmatmul.msk.bf16.vlgmr.msrb.gmra.mxu0 %vm892_vm6, %v639_v9 }
 0x2c1   : > { %1524 = vmatmul.msk.bf16.vlgmr.msra.gmra.mxu2 %vm892_vm6, %v637_v10 }
 0x33c   : > { %v908_v11 = vpop.f32.mrf.mxu1  ;;  %v965_v12 = vpop.f32.mrf.mxu0 }
 0x33d   : > { %v978_v13 = vsel %vm892_vm6, %v965_v12, -inf  ;;  %v969_v14 = vsel %vm892_vm6, %v908_v11, -inf }
 0x33e   : > { %979 = vmax.xlane.f32.xlu2 %v978_v13  ;;  %970 = vmax.xlane.f32.xlu0 %v969_v14 }
 0x340   : > { %v946_v15 = vpop.f32.mrf.mxu3 }
 0x341   : > { %v975_v16 = vsel %vm892_vm6, %v946_v15, -inf }
 0x342   : > { %976 = vmax.xlane.f32.xlu1 %v975_v16 }
 0x344   : > { %v910_v17 = vpop.f32.mrf.mxu1  ;;  %v927_v18 = vpop.f32.mrf.mxu2 }
 0x345   : > { %v967_v19 = vpop.f32.mrf.mxu0  ;;  %v972_v20 = vsel %vm892_vm6, %v927_v18, -inf }
 0x346   : > { %973 = vmax.xlane.f32.xlu2 %v972_v20 }
 0x348   : > { %v948_v21 = vpop.f32.mrf.mxu3 }
 0x34c   : > { %v929_v22 = vpop.f32.mrf.mxu2 }
 0x35b   : > { %1661 = vrot.lane.b32.xlu1 %v1928_v37, %s1775_s23 }
 0x35e   : > { %1666 = vrot.lane.b32.xlu2 %v1931_v40, %s1775_s23 }
 0x3b1   : > { %v980_v23 = vpop.xlane.xlu2 %979  ;;  %v971_v26 = vpop.xlane.xlu0 %970 }
 0x3b2   : > { %v984_v24 = vsub.f32 %v965_v12, %v980_v23  ;;  %v981_v29 = vsub.f32 %v908_v11, %v971_v26 }
 0x3b4   : > { %v991_v25 = vmul.f32 1.442695, %v984_v24  ;;  %v985_v34 = vmul.f32 1.442695, %v981_v29 }
 0x3b5   : > { %v977_v27 = vpop.xlane.xlu1 %976 }
 0x3b6   : > { %1682 = vpow2.f32 %v991_v25  ;;  %v983_v28 = vsub.f32 %v946_v15, %v977_v27 }
 0x3b8   : > { %v989_v30 = vmul.f32 1.442695, %v983_v28 }
 0x3b9   : > { %v974_v31 = vpop.xlane.xlu2 %973 }
 0x3ba   : > { %1684 = vpow2.f32 %v989_v30  ;;  %v982_v32 = vsub.f32 %v927_v18, %v974_v31 }
 0x3bc   : > { %v2032_v33 = vpop.eup %1682  ;;  %v987_v35 = vmul.f32 1.442695, %v982_v32 }
 0x3bd   : > { %v1002_v37 = vsel %vm892_vm6, %v2032_v33, 0.0 }
 0x3be   : > { %1686 = vpow2.f32 %v987_v35  ;;  %1003 = vadd.xlane.f32.xlu2 %v1002_v37 }
 0x3bf   : > { %1688 = vpow2.f32 %v985_v34 }
 0x3c0   : > { %v2036_v40 = vpop.eup %1684 }
 0x3c1   : > { %v999_v36 = vsel %vm892_vm6, %v2036_v40, 0.0  ;;  %v1667_v42 = vpop.permute.xlu2 %1666 }
 0x3c2   : > { %1000 = vadd.xlane.f32.xlu0 %v999_v36  ;;  %v1669_v44 = vunpack.i.h.bf16 %v1667_v42  ;;  %v1668_v45 = vunpack.i.l.bf16 %v1667_v42 }
 0x3c4   : > { %v2040_v38 = vpop.eup %1686  ;;  %v790_v48 = vrot.slane %v1669_v44, 4  ;;  %v778_v49 = vrot.slane %v1668_v45, 4 }
 0x3c5   : > { %v996_v39 = vsel %vm892_vm6, %v2040_v38, 0.0  ;;  %v2044_v41 = vpop.eup %1688 }
 0x3c6   : > { %997 = vadd.xlane.f32.xlu1 %v996_v39  ;;  %v993_v43 = vsel %vm892_vm6, %v2044_v41, 0.0 }
 0x3ca   : > { %994 = vadd.xlane.f32.xlu0 %v993_v43 }
 0x3cd   : > { %v1662_v46 = vpop.permute.xlu1 %1661 }
 0x3ce   : > { %v1664_v50 = vunpack.i.h.bf16 %v1662_v46  ;;  %v1663_v51 = vunpack.i.l.bf16 %v1662_v46 }
 0x3d0   : > { %v792_v52 = vrot.slane %v1664_v50, 4  ;;  %v779_v53 = vsel %vm526_vm5, %v778_v49, %v1663_v51  ;;  %v780_v54 = vrot.slane %v1663_v51, 4  ;;  %v791_v55 = vsel %vm526_vm5, %v790_v48, %v1664_v50 }
 0x3d1   : > { %v785_v56 = vperm.slane %v779_v53, %v1936_v47  ;;  %v797_v57 = vperm.slane %v791_v55, %v1936_v47 }
 0x3d2   : > { %v781_v58 = vsel %vm526_vm5, %v1668_v45, %v780_v54  ;;  %v793_v59 = vsel %vm526_vm5, %v1669_v44, %v792_v52 }
 0x3d3   : > { %v789_v60 = vperm.slane %v781_v58, %v1936_v47  ;;  %v801_v61 = vperm.slane %v793_v59, %v1936_v47  ;;  %v802_v63 = vrot.slane %v797_v57, 4  ;;  %v804_v1 = vrot.slane %v785_v56, 4 }
 0x3d5   : > { %v803_v2 = vsel %vm526_vm5, %v802_v63, %v785_v56  ;;  %v805_v3 = vsel %vm526_vm5, %v797_v57, %v804_v1  ;;  %v814_v4 = vrot.slane %v801_v61, 4  ;;  %v816_v5 = vrot.slane %v789_v60, 4 }
 0x3d6   : > { %v809_v6 = vperm.slane %v803_v2, %v1946_v62  ;;  %v813_v7 = vperm.slane %v805_v3, %v1946_v62 }
 0x3d7   : > { %v815_v9 = vsel %vm526_vm5, %v814_v4, %v789_v60  ;;  %v817_v10 = vsel %vm526_vm5, %v801_v61, %v816_v5 }
 0x3d8   : > { %v821_v11 = vperm.slane %v815_v9, %v1946_v62  ;;  %v825_v12 = vperm.slane %v817_v10, %v1946_v62  ;;  %v826_v13 = vrot.slane %v809_v6, 4  ;;  %v828_v14 = vrot.slane %v813_v7, 4 }
 0x3da   : > { %v829_v15 = vsel %vm526_vm5, 0.0, %v828_v14  ;;  %v830_v16 = vrot.slane %v821_v11, 4  ;;  %v832_v17 = vrot.slane %v825_v12, 4  ;;  %v834_v18 = vsel %vm526_vm5, %v828_v14, %v809_v6 }
 0x3db   : > { %v839_v19 = vrot.slane %v829_v15, 4  ;;  %v827_v20 = vsel %vm526_vm5, 0.0, %v826_v13  ;;  %v838_v22 = vperm.slane %v834_v18, %v1936_v47 }
 0x3dc   : > { %v833_v21 = vsel %vm526_vm5, 0.0, %v832_v17  ;;  %v845_v23 = vsel %vm526_vm5, %v832_v17, %v821_v11  ;;  %v831_v27 = vsel %vm526_vm5, 0.0, %v830_v16 }
 0x3dd   : > { %v850_v24 = vrot.slane %v833_v21, 4  ;;  %v840_v25 = vsel %vm526_vm5, %v839_v19, %v827_v20  ;;  %v849_v26 = vperm.slane %v845_v23, %v1936_v47  ;;  %v858_v29 = vrot.slane %v838_v22, 4 }
 0x3de   : > { %v844_v28 = vperm.slane %v840_v25, %v1936_v47 }
 0x3df   : > { %v851_v30 = vsel %vm526_vm5, %v850_v24, %v831_v27  ;;  %v870_v31 = vrot.slane %v849_v26, 4 }
 0x3e0   : > { %v855_v32 = vperm.slane %v851_v30, %v1936_v47  ;;  %v859_v34 = vsel %vm526_vm5, %v844_v28, %v858_v29  ;;  %v856_v35 = vrot.slane %v844_v28, 4 }
 0x3e1   : > { %v867_v37 = vperm.slane %v859_v34, %v1946_v62 }
 0x3e2   : > { %v871_v36 = vsel %vm526_vm5, %v855_v32, %v870_v31  ;;  %v857_v39 = vsel %vm526_vm5, %v856_v35, %v838_v22  ;;  %v868_v42 = vrot.slane %v855_v32, 4 }
 0x3e3   : > { %v879_v43 = vperm.slane %v871_v36, %v1946_v62  ;;  %v886_v44 = vrot.slane %v867_v37, 4  ;;  %v863_v45 = vperm.slane %v857_v39, %v1946_v62 }
 0x3e4   : > { %v869_v46 = vsel %vm526_vm5, %v868_v42, %v849_v26 }
 0x3e5   : > { %v887_v48 = vsel %vm526_vm5, %v879_v43, %v886_v44  ;;  %v875_v49 = vperm.slane %v869_v46, %v1946_v62  ;;  %v882_v50 = vrot.slane %v863_v45, 4  ;;  %v884_v51 = vrot.slane %v879_v43, 4 }
 0x3e6   : > { %v891_v52 = vpack.c.bf16 %v887_v48, %v887_v48 }
 0x3e7   : > { %v883_v53 = vsel %vm526_vm5, %v875_v49, %v882_v50  ;;  %v885_v54 = vsel %vm526_vm5, %v884_v51, %v867_v37  ;;  %v880_v55 = vrot.slane %v875_v49, 4 }
 0x3e8   : > { %v1079_v56 = vsel %vm1020_vm7, %v891_v52, 0  ;;  %v889_v57 = vpack.c.bf16 %v883_v53, %v883_v53  ;;  %v890_v58 = vpack.c.bf16 %v885_v54, %v885_v54 }
 0x3e9   : > { %1088 = vmatpush.bf16.msra.mxu0 %v1079_v56  ;;  %v881_v59 = vsel %vm526_vm5, %v880_v55, %v863_v45 }
 0x3ea   : > { %v1041_v60 = vsel %vm1020_vm7, %v889_v57, 0  ;;  %v1060_v61 = vsel %vm1020_vm7, %v890_v58, 0  ;;  %v888_v63 = vpack.c.bf16 %v881_v59, %v881_v59 }
 0x3eb   : > { %1050 = vmatpush.bf16.msrb.mxu2 %v1041_v60  ;;  %1069 = vmatpush.bf16.msrb.mxu3 %v1060_v61 }
 0x3ec   : > { %v1022_v1 = vsel %vm1020_vm7, %v888_v63, 0 }
 0x3ed   : > { %1031 = vmatpush.bf16.msrb.mxu1 %v1022_v1 }
 0x431   : > { %v1004_v2 = vpop.xlane.xlu2 %1003 }
 0x432   : > { %1690 = vrcp.f32 %v1004_v2 }
 0x435   : > { %v1001_v3 = vpop.xlane.xlu0 %1000 }
 0x436   : > { %1692 = vrcp.f32 %v1001_v3 }
 0x438   : > { %v1691_v4 = vpop.eup %1690 }
 0x439   : > { %v1012_v5 = vmul.f32 %v1691_v4, %v2032_v33  ;;  %v998_v6 = vpop.xlane.xlu1 %997 }
 0x43a   : > { %1694 = vrcp.f32 %v998_v6 }
 0x43b   : > { %v1016_v7 = vpack.c.bf16 %v1012_v5, %v1012_v5 }
 0x43c   : > { %v1693_v9 = vpop.eup %1692 }
 0x43d   : > { %v1011_v10 = vmul.f32 %v1693_v9, %v2036_v40  ;;  %1530 = vmatmul.msk.bf16.vlgmr.msra.gmra.mxu0 %vm892_vm6, %v1016_v7  ;;  %v995_v11 = vpop.xlane.xlu0 %994 }
 0x43e   : > { %1696 = vrcp.f32 %v995_v11 }
 0x43f   : > { %v1015_v12 = vpack.c.bf16 %v1011_v10, %v1011_v10 }
 0x440   : > { %v1695_v13 = vpop.eup %1694 }
 0x441   : > { %v1010_v14 = vmul.f32 %v1695_v13, %v2040_v38  ;;  %1529 = vmatmul.msk.bf16.vlgmr.msrb.gmra.mxu3 %vm892_vm6, %v1015_v12 }
 0x443   : > { %v1014_v15 = vpack.c.bf16 %v1010_v14, %v1010_v14 }
 0x444   : > { %v1697_v16 = vpop.eup %1696 }
 0x445   : > { %v1009_v33 = vmul.f32 %v1697_v16, %v2044_v41  ;;  %1528 = vmatmul.msk.bf16.vlgmr.msrb.gmra.mxu2 %vm892_vm6, %v1014_v15 }
 0x447   : > { %v1013_v17 = vpack.c.bf16 %v1009_v33, %v1009_v33 }
 0x449   : > { %1527 = vmatmul.msk.bf16.vlgmr.msrb.gmra.mxu1 %vm892_vm6, %v1013_v17 }
 0x4ba   : > { %v1090_v40 = vpop.f32.mrf.mxu0 }
 0x4bb   : > { %v1106_v22 = vrot.slane %v1090_v40, 4 }
 0x4c2   : > { %v1092_v18 = vpop.f32.mrf.mxu0 }
 0x4c4   : > { %v1071_v19 = vpop.f32.mrf.mxu3 }
 0x4c5   : > { %v1094_v20 = vrot.slane %v1071_v19, 4 }
 0x4c6   : > { %v1033_v21 = vpop.f32.mrf.mxu1 }
 0x4c7   : > { %v1095_v23 = vsel %vm526_vm5, %v1094_v20, %v1033_v21  ;;  %v1096_v38 = vrot.slane %v1033_v21, 4 }
 0x4c8   : > { %v1101_v24 = vperm.slane %v1095_v23, %v1936_v47  ;;  %v1052_v25 = vpop.f32.mrf.mxu2 }
 0x4c9   : > { %v1097_v26 = vsel %vm526_vm5, %v1071_v19, %v1096_v38  ;;  %v1107_v41 = vsel %vm526_vm5, %v1106_v22, %v1052_v25  ;;  %v1108_v27 = vrot.slane %v1052_v25, 4  ;;  %v1589_v25 = vld [vmem:[%s2242_s5 + $0x8] sm:$0xff] }
 0x4ca   : > { %v1105_v28 = vperm.slane %v1097_v26, %v1936_v47  ;;  %v1120_v29 = vrot.slane %v1101_v24, 4  ;;  %v1113_v30 = vperm.slane %v1107_v41, %v1936_v47  ;;  %1251 = vmatpush.bf16.msra.mxu1 %v1589_v25  ;;  %v1588_v26 = vld [vmem:[%s2242_s5] sm:$0xff] }
 0x4cb   : > { %v1109_v31 = vsel %vm526_vm5, %v1090_v40, %v1108_v27 }
 0x4cc   : > { %v1132_v32 = vrot.slane %v1105_v28, 4  ;;  %v1117_v34 = vperm.slane %v1109_v31, %v1936_v47  ;;  %v1118_v35 = vrot.slane %v1113_v30, 4  ;;  %v1121_v37 = vsel %vm526_vm5, %v1113_v30, %v1120_v29  ;;  %v1073_v36 = vpop.f32.mrf.mxu3 }
 0x4cd   : > { %v1129_v39 = vperm.slane %v1121_v37, %v1946_v62 }
 0x4ce   : > { %v1119_v42 = vsel %vm526_vm5, %v1118_v35, %v1101_v24  ;;  %v1130_v43 = vrot.slane %v1117_v34, 4  ;;  %v1133_v44 = vsel %vm526_vm5, %v1117_v34, %v1132_v32  ;;  %v1035_v45 = vpop.f32.mrf.mxu1  ;;  %1252 = vmatpush.bf16.msra.mxu1 %v1588_v26  ;;  %v1673_v32 = vld [vmem:[%s2243_s6] ss:$0 sm:$0xff] }
 0x4cf   : > { %v1125_v46 = vperm.slane %v1119_v42, %v1946_v62  ;;  %v1141_v48 = vperm.slane %v1133_v44, %v1946_v62  ;;  %v1144_v49 = vrot.slane %v1129_v39, 4 }
 0x4d0   : > { %v1131_v50 = vsel %vm526_vm5, %v1130_v43, %v1105_v28  ;;  %v1054_v51 = vpop.f32.mrf.mxu2 }
 0x4d1   : > { %v1137_v52 = vperm.slane %v1131_v50, %v1946_v62  ;;  %v1142_v53 = vrot.slane %v1125_v46, 4  ;;  %v1145_v54 = vsel %vm526_vm5, 0.0, %v1144_v49  ;;  %v1148_v55 = vrot.slane %v1141_v48, 4  ;;  %v1591_v48 = vld [vmem:[%s2246_s9 + $0x8] sm:$0xff] }
 0x4d2   : > { %v1155_v56 = vrot.slane %v1145_v54, 4  ;;  %v1150_v60 = vsel %vm526_vm5, %v1144_v49, %v1125_v46  ;;  %1321 = vmatpush.bf16.msra.mxu2 %v1591_v48 }
 0x4d3   : > { %v1143_v57 = vsel %vm526_vm5, 0.0, %v1142_v53  ;;  %v1146_v58 = vrot.slane %v1137_v52, 4  ;;  %v1149_v59 = vsel %vm526_vm5, 0.0, %v1148_v55  ;;  %v1161_v1 = vsel %vm526_vm5, %v1148_v55, %v1137_v52 }
 0x4d4   : > { %v1156_v61 = vsel %vm526_vm5, %v1155_v56, %v1143_v57  ;;  %v1166_v63 = vrot.slane %v1149_v59, 4  ;;  %v1165_v4 = vperm.slane %v1161_v1, %v1936_v47  ;;  %v1154_v6 = vperm.slane %v1150_v60, %v1936_v47 }
 0x4d5   : > { %v1147_v2 = vsel %vm526_vm5, 0.0, %v1146_v58  ;;  %v1160_v3 = vperm.slane %v1156_v61, %v1936_v47  ;;  %v1674_v58 = vld [vmem:[%s2244_s7] ss:$0 sm:$0xff] }
 0x4d6   : > { %v1167_v5 = vsel %vm526_vm5, %v1166_v63, %v1147_v2  ;;  %v1186_v10 = vrot.slane %v1165_v4, 4  ;;  %v1174_v17 = vrot.slane %v1154_v6, 4  ;;  %v1599_v2 = vld [vmem:[%s2248_s11 + $0x38] sm:$0xff] }
 0x4d7   : > { %v1171_v7 = vperm.slane %v1167_v5, %v1936_v47  ;;  %v1172_v9 = vrot.slane %v1160_v3, 4  ;;  %1418 = vmatpush.bf16.msra.mxu3 %v1599_v2  ;;  %v1596_v5 = vld [vmem:[%s2248_s11 + $0x20] sm:$0xff] }
 0x4d8   : > { %v1175_v20 = vsel %vm526_vm5, %v1160_v3, %v1174_v17  ;;  %v1598_v3 = vld [vmem:[%s2248_s11 + $0x30] sm:$0xff] }
 0x4d9   : > { %v1173_v11 = vsel %vm526_vm5, %v1172_v9, %v1154_v6  ;;  %v1184_v12 = vrot.slane %v1171_v7, 4  ;;  %v1187_v15 = vsel %vm526_vm5, %v1171_v7, %v1186_v10  ;;  %v1183_v22 = vperm.slane %v1175_v20, %v1946_v62  ;;  %v1595_v6 = vld [vmem:[%s2248_s11 + $0x18] sm:$0xff]  ;;  %v1594_v7 = vld [vmem:[%s2248_s11 + $0x10] sm:$0xff]  ;;  %v1676_v9 = vld [vmem:[%s2247_s10] ss:$0 sm:$0xff] }
 0x4da   : > { %v1179_v13 = vperm.slane %v1173_v11, %v1946_v62  ;;  %v1195_v47 = vperm.slane %v1187_v15, %v1946_v62  ;;  %v1593_v10 = vld [vmem:[%s2248_s11 + $0x8] sm:$0xff] }
 0x4db   : > { %v1185_v14 = vsel %vm526_vm5, %v1184_v12, %v1165_v4  ;;  %v1202_v38 = vrot.slane %v1183_v22, 4  ;;  %1419 = vmatpush.bf16.msra.mxu3 %v1598_v3  ;;  %v1597_v4 = vld [vmem:[%s2248_s11 + $0x28] sm:$0xff] }
 0x4dc   : > { %v1191_v16 = vperm.slane %v1185_v14, %v1946_v62  ;;  %v1198_v33 = vrot.slane %v1179_v13, 4  ;;  %v1200_v21 = vrot.slane %v1195_v47, 4 }
 0x4dd   : > { %v1203_v24 = vsel %vm526_vm5, %v1195_v47, %v1202_v38 }
 0x4de   : > { %v1196_v40 = vrot.slane %v1191_v16, 4  ;;  %v1199_v18 = vsel %vm526_vm5, %v1191_v16, %v1198_v33  ;;  %v1201_v23 = vsel %vm526_vm5, %v1200_v21, %v1183_v22 }
 0x4df   : > { %1205 = vrot.lane.b32.xlu0 %v1199_v18, %s1776_s24  ;;  %1420 = vmatpush.bf16.msra.mxu3 %v1597_v4  ;;  %s1512_s24 = sshll.u32 %s429_s1, 3 }
 0x4e0   : > { %v1197_v19 = vsel %vm526_vm5, %v1196_v40, %v1179_v13  ;;  %v1592_v13 = vld [vmem:[%s2248_s11] sm:$0xff]  ;;  %s431_s23 = scalar_lea.vmem [#allocation2], %s1512_s24  ;;  %s1724_s24 = scalar_lea.hbm %s2250_s13, 16 }
 0x4e1   : > { %s1446_s0 = sshll.u32 %s431_s23, 4  ;;  %s1447_s0 = int_to_ptr.vmem [resolvable:$true] %s1446_s0 }
 0x4e3   : > { %1421 = vmatpush.bf16.msra.mxu3 %v1596_v5 }
 0x4e7   : > { %1209 = vrot.lane.b32.xlu0 %v1201_v23, %s1777_s30  ;;  %1422 = vmatpush.bf16.msra.mxu3 %v1595_v6  ;;  %s1583_s30 = sshll.u32 %s1870_s29, 3  ;;  %s1434_s29 = scalar_lea.sflag [#allocation3], %s429_s1 }
 0x4e8   : > { %s1444_s22 = scalar_lea.hbm %s2250_s13, %s1583_s30 }
 0x4e9   : > { %s1448_s2 = sshll.u32 %s1444_s22, 4  ;;  %s1449_s2 = int_to_ptr.hbm [resolvable:$true] %s1448_s2 }
 0x4ea   : > { %s1718_s3 = sshra.s32 %s1449_s2, 4  ;;  %s1719_s3 = int_to_ptr.hbm [resolvable:$true] %s1718_s3 }
 0x4eb   : > { %1423 = vmatpush.bf16.msra.mxu3 %v1594_v7  ;;  %p1725_p0 = scmp.lt.s32.totalorder %s1719_s3, %s2250_s13 }
 0x4ef   : > { %1213 = vrot.lane.b32.xlu0 %v1203_v24, %s1778_s15  ;;  %1424 = vmatpush.bf16.msra.mxu3 %v1593_v10  ;;  %s1720_s15 = scalar_lea.hbm %s1719_s3, 8 }
 0x4f0   : > { %p1721_p11 = scmp.ne.s32.totalorder %s1719_s3, %s1720_s15  ;;  %p1726_p1 = scmp.lt.s32.totalorder %s1724_s24, %s1720_s15 }
 0x4f2   : > { %p1722_p12 = pnand %p1721_p11, %p1887_p5  ;;  %p1727_p2 = por %p1726_p1, %p1725_p0 }
 0x4f3   : > { %1425 = vmatpush.bf16.msra.mxu3 %v1592_v13 }
 0x4f4   : > { %p1723_p13 = pneg %p1722_p12 }
 0x4f6   : > { %p1728_p3 = pnand %p1727_p2, %p1723_p13 }
 0x551   : > { %v1206_v62 = vpop.permute.xlu0 %1205 }
 0x552   : > { %v1216_v27 = vsel %vm892_vm6, %v1197_v19, %v1206_v62  ;;  %v1677_v62 = vld [vmem:[%s2249_s12] ss:$0 sm:$0xff] }
 0x559   : > { %v1210_v41 = vpop.permute.xlu0 %1209 }
 0x55a   : > { %v1218_v28 = vsel %vm1217_vm8, %v1216_v27, %v1210_v41 }
 0x561   : > { %v1214_v29 = vpop.permute.xlu0 %1213 }
 0x562   : > { %v1220_v30 = vsel %vm1219_vm9, %v1218_v28, %v1214_v29 }
 0x563   : > { %v1221_v31 = vpack.c.bf16 %v1220_v30, %v1220_v30 }
 0x565   : > { %1539 = vmatmul.msk.bf16.vlgmr.msra.gmra.mxu1 %vm440_vm0, %v1221_v31 }
 0x5e2   : > { %v1254_v34 = vpop.f32.mrf.mxu1 }
 0x5e3   : > { %v1255_v35 = vadd.f32 %v1673_v32, %v1254_v34 }
 0x5e5   : > { %v2152_v37 = vadd.f32 %v1255_v35, %v1902_v0  ;;  %v1590_v0 = vld [vmem:[%s2246_s9] sm:$0xff] }
 0x5e6   : > { %1322 = vmatpush.bf16.msra.mxu2 %v1590_v0 }
 0x5e7   : > { %v1261_v36 = vsel %vm440_vm0, %v2152_v37, 0.0 }
 0x5e8   : > { %1262 = vadd.xlane.f32.xlu1 %v1261_v36 }
 0x5ea   : > { %v1256_v39 = vpop.f32.mrf.mxu1 }
 0x65b   : > { %v1263_v42 = vpop.xlane.xlu1 %1262 }
 0x65c   : > { %v1264_v43 = vmul.f32 %v1263_v42, %v1906_v8 }
 0x65e   : > { %v1265_v44 = vsub.f32 %v2152_v37, %v1264_v43 }
 0x660   : > { %v1266_v45 = vmul.f32 %v1265_v44, %v1265_v44 }
 0x662   : > { %v1267_v46 = vsel %vm440_vm0, %v1266_v45, 0.0 }
 0x663   : > { %1268 = vadd.xlane.f32.xlu0 %v1267_v46 }
 0x6d6   : > { %v1269_v49 = vpop.xlane.xlu0 %1268 }
 0x6d7   : > { %v1270_v50 = vmul.f32 %v1269_v49, %v1906_v8  ;;  %v1675_v8 = vld [vmem:[%s2245_s8] ss:$0 sm:$0xff] }
 0x6d9   : > { %v1271_v51 = vadd.f32 1e-05, %v1270_v50 }
 0x6db   : > { %1698 = vrsqrt.f32 %v1271_v51  ;;  %vm1278_vm11 = vweird.f32 %v1271_v51 }
 0x6e1   : > { %v1699_v52 = vpop.eup %1698 }
 0x6e2   : > { %v1273_v53 = vmul.f32 %v1699_v52, %v1271_v51  ;;  %vm1279_vm10 = vweird.f32 %v1699_v52 }
 0x6e3   : > { %vm1280_vm12 = vmor %vm1278_vm11, %vm1279_vm10 }
 0x6e4   : > { %v1274_v54 = vmul.f32 %v1699_v52, %v1273_v53 }
 0x6e6   : > { %v1275_v55 = vmul.f32 0.5, %v1274_v54 }
 0x6e8   : > { %v1276_v56 = vsub.f32 1.5, %v1275_v55 }
 0x6ea   : > { %v1277_v57 = vmul.f32 %v1699_v52, %v1276_v56 }
 0x6ec   : > { %v1281_v59 = vsel %vm1280_vm12, %v1699_v52, %v1277_v57 }
 0x6ed   : > { %v1282_v60 = vmul.f32 %v1281_v59, %v1265_v44 }
 0x6ef   : > { %v1286_v61 = vmul.f32 %v1674_v58, %v1282_v60 }
 0x6f1   : > { %v1290_v63 = vadd.f32 %v1675_v8, %v1286_v61 }
 0x6f3   : > { %v1291_v1 = vpack.c.bf16 %v1290_v63, %v1290_v63 }
 0x6f5   : > { %1548 = vmatmul.msk.bf16.vlgmr.msra.gmra.mxu2 %vm440_vm0, %v1291_v1 }
 0x778   : > { %v1324_v11 = vpop.f32.mrf.mxu2 }
 0x779   : > { %v1325_v12 = vadd.f32 %v1676_v9, %v1324_v11 }
 0x77b   : > { %v1549_v14 = vmul.f32 -1.702, %v1325_v12 }
 0x77d   : > { %v1330_v15 = vmul.f32 1.442695, %v1549_v14 }
 0x77f   : > { %1700 = vpow2.f32 %v1330_v15 }
 0x780   : > { %v1326_v16 = vpop.f32.mrf.mxu2 }
 0x785   : > { %v1701_v33 = vpop.eup %1700 }
 0x786   : > { %v1332_v17 = vadd.f32 1.0, %v1701_v33 }
 0x788   : > { %1702 = vrcp.f32 %v1332_v17  ;;  %v1344_v19 = vand.u32 2147483648, %v1332_v17  ;;  %v1342_v21 = vand.u32 2147483647, %v1332_v17  ;;  %vm1338_vm14 = vweird.f32 %v1332_v17 }
 0x78a   : > { %v1345_v23 = vor.u32 1.1754944e-38, %v1344_v19  ;;  %vm1343_vm1 = vcmp.eq.f32.partialorder %v1342_v21, 8.507059e+37 }
 0x78e   : > { %v1703_v40 = vpop.eup %1702 }
 0x78f   : > { %v1334_v18 = vmul.f32 %v1703_v40, %v1332_v17  ;;  %vm1339_vm13 = vweird.f32 %v1703_v40 }
 0x790   : > { %vm1340_vm15 = vmor %vm1338_vm14, %vm1339_vm13 }
 0x791   : > { %v1335_v47 = vsub.f32 1.0, %v1334_v18 }
 0x793   : > { %v1336_v20 = vmul.f32 %v1703_v40, %v1335_v47 }
 0x795   : > { %v1337_v22 = vadd.f32 %v1703_v40, %v1336_v20 }
 0x797   : > { %v1341_v38 = vsel %vm1340_vm15, %v1703_v40, %v1337_v22 }
 0x798   : > { %v1346_v24 = vsel %vm1343_vm1, %v1345_v23, %v1341_v38 }
 0x799   : > { %v1348_v25 = vmul.f32 %v1346_v24, %v1325_v12 }
 0x79b   : > { %v1349_v26 = vpack.c.bf16 %v1348_v25, %v1348_v25 }
 0x79d   : > { %1426 = vmatmul.bf16.vlgmr.msra.gmra.mxu3 %v1349_v26 }
 0x820   : > { %v1427_v41 = vpop.f32.mrf.mxu3 }
 0x821   : > { %v1428_v27 = vadd.f32 %v1677_v62, %v1427_v41 }
 0x823   : > { %v1431_v28 = vadd.f32 %v1428_v27, %v2152_v37 }
 0x825   : > { %1432 = vst.msk [vmem:[%s431_s23] sm:$0xff] %vm440_vm0, %v1431_v28 }
 0x826   : > { %1731 = shalt.err (!%p1728_p3)
}
 0x827   : > { %1600 = dma.vmem_to_hbm [thread:$0]  (%p1887_p5), %s1447_s0, 128, %s1449_s2, %s1434_s29  }
 0x828   : > { %v1429_v29 = vpop.f32.mrf.mxu3 }
 0x829 PF: > { %p1606_p4 = scmp.ge.s32.totalorder %s1766_s28, 2  ;;  %s1460_s1 = sand.u32 1, %s1754_s25  }
 0x82a   : > { %s1461_s22 = scalar_lea.sflag [#allocation3], %s1460_s1 }
 0x82b   : > { %p1603_p7 = pnand %p1606_p4, %p1891_p6 }
 0x82d   : > { %p1604_p8 = pneg %p1603_p7 }
 0x82f   : > { %1749 = dma.done.wait (%p1604_p8), %s1461_s22, 128  }
 0x830   : > { %1751 = vsyncadd (%p1604_p8), %s1461_s22, 4294967168  ;;  %p23_p9 = scmp.ge.s32.totalorder %s1874_s14, 4   ;;  %s2261_s25 = smov %s1758_s26 }
 0x831   : > { %s2262_s26 = smov %s1762_s27  ;;  %s2263_s27 = smov %s1885_s17 }
 0x832   : > { %s2264_s28 = smov %s1874_s14  ;;  %25 = sbr.rel (!%p23_p9) target bundleno = 8 (0x8), region = 107 }
 0x837   :  { %1467 = vsyncpa [#allocation3], 1 }
 0x838   :  { %1469 = vsyncpa [#allocation3 + $0x1], 1 }

</bundles_post_ra>
